<compile_context>
chip_gen: v6e
topology: v6e:2x2x1
jax: 0.10.0
libtpu: 0.0.40
codegen_flags: <defaults>
</compile_context>

<pallas_src>
import jax
import jax.numpy as jnp
from jax.experimental import pallas as pl
from jax.experimental.pallas import tpu as pltpu

LANE = 128


def _round_up(a, m):
    return ((a + m - 1) // m) * m


def adapter_kernel(x_ref, w1_ref, w2_ref, w3_ref, oT_ref):
    """One column tile of the transposed MLP.

    x_ref : (tn, c_in)   row tile of x in natural layout (no HBM transpose)
    w1/w2/w3 : PyTorch [out, in] layout, fully resident in VMEM
    oT_ref: (c_out, tn)  transposed output tile (N on the lane axis ->
                         lane-dense, unmasked stores)
    """
    cdt = w1_ref.dtype
    x = x_ref[...]
    # h1^T = W1 @ x^T, written as A @ B^T (contract both operands' last dim)
    # so the x tile is consumed exactly as streamed from HBM.
    h1 = jax.lax.dot_general(
        w1_ref[...], x, (((1,), (1,)), ((), ())),
        preferred_element_type=jnp.float32,
    )
    h1 = jnp.maximum(h1, 0.0).astype(cdt)                      # (hidden, tn)
    h2 = jnp.maximum(
        jnp.dot(w2_ref[...], h1, preferred_element_type=jnp.float32), 0.0
    ).astype(cdt)                                              # (hidden, tn)
    yT = jnp.maximum(
        jnp.dot(w3_ref[...], h2, preferred_element_type=jnp.float32), 0.0
    )                                                          # (c_out, tn)
    oT_ref[...] = yT.astype(oT_ref.dtype)


def adapter_forward(x, w1, w2, w3, *, tn=None, compute_dtype=None):
    """Adapter forward pass.

    x : [..., c_in]   (arbitrary leading batch dims, flattened internally)
    w1: [hidden, c_in], w2: [hidden, hidden], w3: [c_out, hidden]
        -- native PyTorch nn.Linear ([out, in]) layout, used as-is.
    compute_dtype: optional cast of x/weights (e.g. jnp.bfloat16 on v6e/v7x
        when the producer is already bf16); accumulation stays fp32.
    """
    orig_shape = x.shape
    c_in = orig_shape[-1]
    hidden = w1.shape[0]
    c_out = w3.shape[0]
    assert w1.shape == (hidden, c_in)
    assert w2.shape == (hidden, hidden)
    assert w3.shape == (c_out, hidden)

    out_dtype = x.dtype
    x2 = x.reshape(-1, c_in)
    N = x2.shape[0]

    if compute_dtype is not None:
        x2 = x2.astype(compute_dtype)
        w1 = w1.astype(compute_dtype)
        w2 = w2.astype(compute_dtype)
        w3 = w3.astype(compute_dtype)

    # ---- column (lane-axis) tile selection -------------------------------
    if tn is None:
        tn = 8192                      # amortizes ~0.35us/step overhead
    tn = max(LANE, (tn // LANE) * LANE)
    n_ceil = _round_up(max(N, 1), LANE)
    if tn >= n_ceil:
        if n_ceil >= 2 * LANE:
            # Split into >=2 balanced tiles so both v7x TensorCores get work.
            tn = _round_up((N + 1) // 2, LANE)
        else:
            tn = n_ceil
    grid = (pl.cdiv(N, tn),)

    # ---- explicit scoped-VMEM budget (v5e default is only 16 MiB) --------
    itemsize = jnp.dtype(x2.dtype).itemsize
    streamed = tn * (c_in + c_out) * itemsize            # x tile + out tile
    temps = tn * (2 * hidden + c_out) * 4                # fp32 temporaries
    weights = (hidden * c_in + hidden * hidden + c_out * hidden) * itemsize
    vmem_bytes = 2 * streamed + temps + weights + (2 << 20)
    vmem_limit = int(min(64 << 20, max(32 << 20, vmem_bytes)))

    yT = pl.pallas_call(
        adapter_kernel,
        out_shape=jax.ShapeDtypeStruct((c_out, N), out_dtype),
        grid_spec=pltpu.PrefetchScalarGridSpec(
            num_scalar_prefetch=0,
            grid=grid,
            in_specs=[
                pl.BlockSpec((tn, c_in), lambda j: (j, 0)),        # x rows
                pl.BlockSpec((hidden, c_in), lambda j: (0, 0)),    # W1 resident
                pl.BlockSpec((hidden, hidden), lambda j: (0, 0)),  # W2 resident
                pl.BlockSpec((c_out, hidden), lambda j: (0, 0)),   # W3 resident
            ],
            out_specs=pl.BlockSpec((c_out, tn), lambda j: (0, j)),
        ),
        compiler_params=pltpu.CompilerParams(
            dimension_semantics=("parallel",),   # tiles shard across TCs (v7x)
            vmem_limit_bytes=vmem_limit,
        ),
    )(x2, w1, w2, w3)

    # TODO(synk): if the consumer accepts a (c_out, N) layout, return yT
    # directly and skip this HBM transpose.
    y = yT.T.astype(out_dtype)
    return y.reshape(*orig_shape[:-1], c_out)


def adapter_reference(x, w1, w2, w3):
    # PyTorch nn.Linear ([out, in]) weights: y = relu(x @ W^T)
    h = jnp.maximum(x @ w1.T, 0.0)
    h = jnp.maximum(h @ w2.T, 0.0)
    return jnp.maximum(h @ w3.T, 0.0)


if __name__ == "__main__":
    # Adapter config: c_in=32, reduction=4 -> hidden=8, c_out=16
    c_in, reduction, c_out = 32, 4, 16
    hidden = c_in // reduction

    key = jax.random.PRNGKey(0)
    kx, k1, k2, k3, kx2 = jax.random.split(key, 5)

    # PyTorch nn.Linear weights are [out, in]; used as-is by the kernel.
    w1 = jax.random.normal(k1, (hidden, c_in), dtype=jnp.float32) * 0.1
    w2 = jax.random.normal(k2, (hidden, hidden), dtype=jnp.float32) * 0.1
    w3 = jax.random.normal(k3, (c_out, hidden), dtype=jnp.float32) * 0.1

    # Small, CLIP-feature-like input: (batch=2, seq=8, c_in=32) -> N=16.
    x = jax.random.normal(kx, (2, 8, c_in), dtype=jnp.float32)
    out = adapter_forward(x, w1, w2, w3)
    jax.block_until_ready(out)
    ref = adapter_reference(x, w1, w2, w3)
    assert out.shape == (2, 8, c_out)
    assert jnp.allclose(out, ref, atol=1e-4, rtol=1e-4), "mismatch (small N)"

    # Second check: ragged N across >=2 grid steps (exercises partial blocks).
    xb = jax.random.normal(kx2, (300, c_in), dtype=jnp.float32)
    outb = adapter_forward(xb, w1, w2, w3)
    jax.block_until_ready(outb)
    refb = adapter_reference(xb, w1, w2, w3)
    assert outb.shape == (300, c_out)
    assert jnp.allclose(outb, refb, atol=1e-4, rtol=1e-4), "mismatch (ragged N)"

    print("KERNEL_OK")
</pallas_src>

<mosaic_0001>
module attributes {stable_mosaic.version = 11 : i64} {
  func.func @adapter_kernel(%arg0: i32, %arg1: memref<128x32xf32, #tpu.memory_space<vmem>>, %arg2: memref<8x32xf32, #tpu.memory_space<vmem>>, %arg3: memref<8x8xf32, #tpu.memory_space<vmem>>, %arg4: memref<16x8xf32, #tpu.memory_space<vmem>>, %arg5: memref<16x128xf32, #tpu.memory_space<vmem>>) attributes {dimension_semantics = [#tpu.dimension_semantics<parallel>], iteration_bounds = array<i64: 1>, scalar_prefetch = 0 : i64, scratch_operands = 0 : i64, tpu.core_type = #tpu.core_type<tc>, window_params = [{transform_indices = @transform_0, window_bounds = array<i64: 128, 32>}, {pipeline_mode = #tpu.pipeline_mode<synchronous>, transform_indices = @transform_1, window_bounds = array<i64: 8, 32>}, {pipeline_mode = #tpu.pipeline_mode<synchronous>, transform_indices = @transform_2, window_bounds = array<i64: 8, 8>}, {pipeline_mode = #tpu.pipeline_mode<synchronous>, transform_indices = @transform_3, window_bounds = array<i64: 16, 8>}, {transform_indices = @transform_4, window_bounds = array<i64: 16, 128>}]} {
    %c0 = arith.constant 0 : index
    %c0_0 = arith.constant 0 : index
    %0 = vector.load %arg1[%c0, %c0_0] : memref<128x32xf32, #tpu.memory_space<vmem>>, vector<128x32xf32>
    %c0_1 = arith.constant 0 : index
    %c0_2 = arith.constant 0 : index
    %1 = vector.load %arg2[%c0_1, %c0_2] : memref<8x32xf32, #tpu.memory_space<vmem>>, vector<8x32xf32>
    %cst = arith.constant dense<0.000000e+00> : vector<8x128xf32>
    %2 = tpu.matmul %1, %0, %cst {dimension_numbers = #tpu.dot_dimension_numbers<[1], [1], [0], [0], [0, 0, 1, 0], [], []>} : vector<8x32xf32>, vector<128x32xf32>, vector<8x128xf32> -> vector<8x128xf32>
    %cst_3 = arith.constant 0.000000e+00 : f32
    %3 = vector.broadcast %cst_3 : f32 to vector<8x128xf32>
    %4 = arith.maximumf %2, %3 : vector<8x128xf32>
    %c0_4 = arith.constant 0 : index
    %c0_5 = arith.constant 0 : index
    %5 = vector.load %arg3[%c0_4, %c0_5] : memref<8x8xf32, #tpu.memory_space<vmem>>, vector<8x8xf32>
    %cst_6 = arith.constant dense<0.000000e+00> : vector<8x128xf32>
    %6 = tpu.matmul %5, %4, %cst_6 {dimension_numbers = #tpu.dot_dimension_numbers<[1], [0], [0], [1], [0, 0, 1, 1], [], []>} : vector<8x8xf32>, vector<8x128xf32>, vector<8x128xf32> -> vector<8x128xf32>
    %cst_7 = arith.constant 0.000000e+00 : f32
    %7 = vector.broadcast %cst_7 : f32 to vector<8x128xf32>
    %8 = arith.maximumf %6, %7 : vector<8x128xf32>
    %c0_8 = arith.constant 0 : index
    %c0_9 = arith.constant 0 : index
    %9 = vector.load %arg4[%c0_8, %c0_9] : memref<16x8xf32, #tpu.memory_space<vmem>>, vector<16x8xf32>
    %cst_10 = arith.constant dense<0.000000e+00> : vector<16x128xf32>
    %10 = tpu.matmul %9, %8, %cst_10 {dimension_numbers = #tpu.dot_dimension_numbers<[1], [0], [0], [1], [0, 0, 1, 1], [], []>} : vector<16x8xf32>, vector<8x128xf32>, vector<16x128xf32> -> vector<16x128xf32>
    %cst_11 = arith.constant 0.000000e+00 : f32
    %11 = vector.broadcast %cst_11 : f32 to vector<16x128xf32>
    %12 = arith.maximumf %10, %11 : vector<16x128xf32>
    %c0_12 = arith.constant 0 : index
    %c0_13 = arith.constant 0 : index
    %13 = vector.load %arg5[%c0_12, %c0_13] : memref<16x128xf32, #tpu.memory_space<vmem>>, vector<16x128xf32>
    tpu.vector_store %arg5[%c0_12, %c0_13], %12 {strides = array<i32>} : memref<16x128xf32, #tpu.memory_space<vmem>>, vector<16x128xf32>,
    return
  }
  func.func @transform_0(%arg0: i32) -> (i32, i32) {
    %c0_i32 = arith.constant 0 : i32
    %c0_i32_0 = arith.constant 0 : i32
    return %arg0, %c0_i32 : i32, i32
  }
  func.func @transform_1(%arg0: i32) -> (i32, i32) {
    %c0_i32 = arith.constant 0 : i32
    %c0_i32_0 = arith.constant 0 : i32
    %c0_i32_1 = arith.constant 0 : i32
    return %c0_i32, %c0_i32_0 : i32, i32
  }
  func.func @transform_2(%arg0: i32) -> (i32, i32) {
    %c0_i32 = arith.constant 0 : i32
    %c0_i32_0 = arith.constant 0 : i32
    %c0_i32_1 = arith.constant 0 : i32
    return %c0_i32, %c0_i32_0 : i32, i32
  }
  func.func @transform_3(%arg0: i32) -> (i32, i32) {
    %c0_i32 = arith.constant 0 : i32
    %c0_i32_0 = arith.constant 0 : i32
    %c0_i32_1 = arith.constant 0 : i32
    return %c0_i32, %c0_i32_0 : i32, i32
  }
  func.func @transform_4(%arg0: i32) -> (i32, i32) {
    %c0_i32 = arith.constant 0 : i32
    %c0_i32_0 = arith.constant 0 : i32
    return %c0_i32, %arg0 : i32, i32
  }
}

</mosaic_0001>

<bundles_post_ra>
// kernel: tpu_custom_call.1
= control target key start
LH: loop header
LB: loop body
LE: loop exit
PB: predicated region body
PF: predicated region fallthrough
CT: control target
= control target key end

     0   :  { %9 = vsyncpa [#allocation3], 0  ;;  %s598_s0 = inlined_call_operand.vmem [shape: f32[16,32], index: 0, kind: input, shape index: {}]   ;;  %s599_s1 = inlined_call_operand.vmem [shape: f32[8,32], index: 1, kind: input, shape index: {}]   ;;  %s600_s2 = inlined_call_operand.hbm [shape: f32[8,8], index: 2, kind: input, shape index: {}]   ;;  %s601_s3 = inlined_call_operand.vmem [shape: f32[16,8], index: 3, kind: input, shape index: {}]   ;;  %s602_s4 = inlined_call_operand.hbm [shape: f32[16,16], index: 4, kind: output, shape index: {}]  }
   0x1   :  { %10 = vsyncpa [#allocation4], 0  ;;  %s487_s15 = smov [#allocation2]  }
   0x2   :  { %s21_s16 = sshll.u32 %s487_s15, 4  ;;  %s22_s16 = int_to_ptr.vmem [resolvable:$true] %s21_s16 }
   0x3   :  { %s451_s17 = scalar_lea.vmem %s22_s16, 128  ;;  %p456_p1 = scmp.lt.s32.totalorder %s22_s16, %s22_s16 }
   0x4   :  { %p452_p0 = scmp.ne.s32.totalorder %s22_s16, %s451_s17  ;;  %p457_p2 = scmp.lt.s32.totalorder %s451_s17, %s451_s17 }
   0x6   :  { %p458_p3 = por %p457_p2, %p456_p1 }
   0x8   :  { %p459_p4 = pnand %p458_p3, %p452_p0 }
   0xa   :  { %462 = shalt.err (!%p459_p4)
}
   0xb   :  { %24 = dma.hbm_to_vmem [thread:$0]  %s600_s2, 128, %s22_s16, [#allocation3]  }
   0xc   :  { %483 = dma.done.wait [#allocation3], 128  }
   0xd   :  { %484 = vsyncadd [#allocation3], 4294967168  ;;  %v488_v0 = vmov 0.0   ;;  %vm489_vm0 = vmmov 0   ;;  %vm47_vm1 = vcmask 261120   ;;  %v45_v1 = vld [vmem:[%s598_s0 + $0x78] sm:$0xff] }
   0xe   :  { %392 = vmatprep.subr.mxu0 %v488_v0  ;;  %424 = vmatprep.mubr.msk.f32.mxu0 %vm489_vm0, %v488_v0  ;;  %v44_v2 = vld [vmem:[%s598_s0 + $0x70] sm:$0xff]  ;;  %v43_v3 = vld [vmem:[%s598_s0 + $0x68] sm:$0xff]  ;;  %v42_v4 = vld [vmem:[%s598_s0 + $0x60] sm:$0xff]  ;;  %vm171_vm2 = vcmask 64512  }
   0xf   :  { %427 = vmatprep.subr.mxu1 %v488_v0  ;;  %429 = vmatprep.mubr.msk.f32.mxu1 %vm489_vm0, %v488_v0  ;;  %v41_v5 = vld [vmem:[%s598_s0 + $0x58] sm:$0xff]  ;;  %v40_v6 = vld [vmem:[%s598_s0 + $0x50] sm:$0xff]  ;;  %v39_v7 = vld [vmem:[%s598_s0 + $0x48] sm:$0xff] }
  0x10   :  { %393 = vmatpush3.xpose.msk.msra.mxu0 %vm47_vm1, %v45_v1  ;;  %v38_v8 = vld [vmem:[%s598_s0 + $0x40] sm:$0xff]  ;;  %v37_v9 = vld [vmem:[%s598_s0 + $0x38] sm:$0xff]  ;;  %v36_v10 = vld [vmem:[%s598_s0 + $0x30] sm:$0xff] }
  0x11   :  { %394 = vmatprep.subr.mxu0 %v488_v0  ;;  %v35_v11 = vld [vmem:[%s598_s0 + $0x28] sm:$0xff]  ;;  %v34_v12 = vld [vmem:[%s598_s0 + $0x20] sm:$0xff]  ;;  %v33_v13 = vld [vmem:[%s598_s0 + $0x18] sm:$0xff] }
  0x12   :  { %v32_v14 = vld [vmem:[%s598_s0 + $0x10] sm:$0xff]  ;;  %v31_v15 = vld [vmem:[%s598_s0 + $0x8] sm:$0xff]  ;;  %v30_v16 = vld [vmem:[%s598_s0] sm:$0xff] }
  0x13   :  { %v46_v17 = vld [vmem:[%s599_s1] sm:$0xff]  ;;  %v247_v26 = vld [vmem:[%s601_s3 + $0x8] sm:$0xff]  ;;  %s490_s1 = smov [#allocation5]  }
  0x14   :  { %395 = vmatpush3.xpose.msk.msra.mxu0 %vm47_vm1, %v44_v2  ;;  %v170_v20 = vld [vmem:[#allocation2] sm:$0xff]  ;;  %s338_s29 = sshll.u32 %s490_s1, 4  ;;  %s339_s29 = int_to_ptr.vmem [resolvable:$true] %s338_s29 }
  0x15   :  { %396 = vmatprep.subr.mxu0 %v488_v0  ;;  %v246_v22 = vld [vmem:[%s601_s3] sm:$0xff]  ;;  %s463_s30 = scalar_lea.vmem %s339_s29, 256  ;;  %p468_p6 = scmp.lt.s32.totalorder %s339_s29, %s339_s29 }
  0x16   :  { %p464_p5 = scmp.ne.s32.totalorder %s339_s29, %s463_s30  ;;  %p469_p7 = scmp.lt.s32.totalorder %s463_s30, %s463_s30 }
  0x18   :  { %397 = vmatpush3.xpose.msk.msra.mxu0 %vm47_vm1, %v43_v3  ;;  %p470_p8 = por %p469_p7, %p468_p6 }
  0x19   :  { %398 = vmatprep.subr.mxu0 %v488_v0 }
  0x1a   :  { %p471_p9 = pnand %p470_p8, %p464_p5 }
  0x1c   :  { %399 = vmatpush3.xpose.msk.msra.mxu0 %vm47_vm1, %v42_v4 }
  0x1d   :  { %400 = vmatprep.subr.mxu0 %v488_v0 }
  0x20   :  { %401 = vmatpush3.xpose.msk.msra.mxu0 %vm47_vm1, %v41_v5 }
  0x21   :  { %402 = vmatprep.subr.mxu0 %v488_v0 }
  0x24   :  { %403 = vmatpush3.xpose.msk.msra.mxu0 %vm47_vm1, %v40_v6 }
  0x25   :  { %404 = vmatprep.subr.mxu0 %v488_v0 }
  0x28   :  { %405 = vmatpush3.xpose.msk.msra.mxu0 %vm47_vm1, %v39_v7 }
  0x29   :  { %406 = vmatprep.subr.mxu0 %v488_v0 }
  0x2c   :  { %407 = vmatpush3.xpose.msk.msra.mxu0 %vm47_vm1, %v38_v8 }
  0x2d   :  { %408 = vmatprep.subr.mxu0 %v488_v0 }
  0x30   :  { %409 = vmatpush3.xpose.msk.msra.mxu0 %vm47_vm1, %v37_v9 }
  0x31   :  { %410 = vmatprep.subr.mxu0 %v488_v0 }
  0x34   :  { %411 = vmatpush3.xpose.msk.msra.mxu0 %vm47_vm1, %v36_v10 }
  0x35   :  { %412 = vmatprep.subr.mxu0 %v488_v0 }
  0x38   :  { %413 = vmatpush3.xpose.msk.msra.mxu0 %vm47_vm1, %v35_v11 }
  0x39   :  { %414 = vmatprep.subr.mxu0 %v488_v0 }
  0x3c   :  { %415 = vmatpush3.xpose.msk.msra.mxu0 %vm47_vm1, %v34_v12 }
  0x3d   :  { %416 = vmatprep.subr.mxu0 %v488_v0 }
  0x40   :  { %417 = vmatpush3.xpose.msk.msra.mxu0 %vm47_vm1, %v33_v13 }
  0x41   :  { %418 = vmatprep.subr.mxu0 %v488_v0 }
  0x44   :  { %419 = vmatpush3.xpose.msk.msra.mxu0 %vm47_vm1, %v32_v14 }
  0x45   :  { %420 = vmatprep.subr.mxu0 %v488_v0 }
  0x48   :  { %421 = vmatpush3.xpose.msk.msra.mxu0 %vm47_vm1, %v31_v15 }
  0x49   :  { %422 = vmatprep.subr.mxu0 %v488_v0 }
  0x4c   :  { %423 = vmatpush3.xpose.msk.msra.mxu0 %vm47_vm1, %v30_v16 }
  0x4f   :  { %425 = vmatmul.mubr.msk.f32.vlgmr.msra.gmra.mxu0 %vm47_vm1, %v46_v17 }
 0x10f   :  { %v165_v18 = vpop.f32.mrf.mxu0 }
 0x110   :  { %v169_v19 = vmax.f32 %v165_v18, 0.0 }
 0x111   :  { %v426_v21 = vpop.f32.mrf.mxu0 }
 0x112   :  { %428 = vmatpush3.msra.mxu1 %v169_v19 }
 0x113   :  { %430 = vmatmul.mubr.msk.f32.vlgmr.msra.gmra.mxu1 %vm171_vm2, %v170_v20 }
 0x114   :  { %434 = vmatprep.mubr.msk.f32.mxu1 %vm171_vm2, %v246_v22 }
 0x1d3   :  { %v241_v23 = vpop.f32.mrf.mxu1 }
 0x1d4   :  { %v245_v24 = vmax.f32 %v241_v23, 0.0 }
 0x1d5   :  { %v431_v25 = vpop.f32.mrf.mxu1 }
 0x1d6   :  { %432 = vmatprep.subr.mxu1 %v245_v24 }
 0x1d7   :  { %433 = vmatpush3.msra.mxu1 %v245_v24 }
 0x1d8   :  { %435 = vmatmul.mubr.msk.f32.vlgmr.msra.gmra.mxu1 %vm171_vm2, %v247_v26 }
 0x298   :  { %v436_v27 = vpop.f32.mrf.mxu1 }
 0x299   :  { %v330_v28 = vmax.f32 %v436_v27, 0.0 }
 0x29a   :  { %v320_v29 = vpop.f32.mrf.mxu1 }
 0x29b   :  { %332 = vst [vmem:[#allocation5 + $0x8] sm:$0xff] %v330_v28  ;;  %v329_v30 = vmax.f32 %v320_v29, 0.0 }
 0x29d   :  { %331 = vst [vmem:[#allocation5] sm:$0xff] %v329_v30 }
 0x29e   :  { %474 = shalt.err (!%p471_p9)
}
 0x29f   :  { %s491_s3 = smov 128   ;;  %s492_s5 = smov 8  }
 0x2a0   :  { %344 = dma.vmem_to_hbm [thread:$0]  %s339_s29, 256, %s602_s4, [#allocation4], %s491_s3, %s491_s3, %s492_s5  }
 0x2a1   :  { %485 = dma.done.wait [#allocation4], 256  }
 0x2a2   :  { %486 = vsyncadd [#allocation4], 4294967040 }
 0x2a3   :  { %348 = vsyncpa [#allocation3], 1 }
 0x2a4   :  { %349 = vsyncpa [#allocation4], 1 }

</bundles_post_ra>
